<compile_context>
chip_gen: v7x
topology: tpu7x:2x2x1
jax: 0.10.0
libtpu: 0.0.40
codegen_flags: <defaults>
</compile_context>

<pallas_src>
import jax
import jax.numpy as jnp
from jax.experimental import pallas as pl
from jax.experimental.pallas import tpu as pltpu

BN_EPS = 1e-5
LANE = 128          # TPU vreg lane width — keep feature axis lane-dense.
MISH_CLAMP = 20.0   # tanh(softplus(z)) == 1.0 to f32 precision above this.


def _round_up(x, m):
    return (x + m - 1) // m * m


def _pad_axis(a, target, axis):
    pad = target - a.shape[axis]
    if pad == 0:
        return a
    widths = [(0, 0)] * a.ndim
    widths[axis] = (0, pad)
    return jnp.pad(a, widths)


def _dense_block(h, w, gamma, beta):
    """Mish(BatchNorm1d(h @ w)) on one whole-batch tile (f32 in / f32 out).

    Linear bias is omitted on purpose: training-mode BN's batch-mean
    subtraction cancels a per-feature constant bias exactly.
    """
    # ---- Linear on the MXU: bf16 operands, f32 accumulation ----
    y = jnp.dot(h.astype(jnp.bfloat16), w.astype(jnp.bfloat16),
                preferred_element_type=jnp.float32)

    # ---- BatchNorm1d (training mode: batch mean, biased variance) ----
    inv_n = 1.0 / y.shape[0]
    mean = jnp.sum(y, axis=0, keepdims=True) * inv_n
    d = y - mean
    var = jnp.sum(d * d, axis=0, keepdims=True) * inv_n
    z = gamma * (d * jax.lax.rsqrt(var + BN_EPS)) + beta

    # ---- Mish with a single EUP transcendental ----
    # tanh(softplus(z)) = ((1+e^z)^2 - 1) / ((1+e^z)^2 + 1); clamp big z.
    e = jnp.exp(jnp.minimum(z, MISH_CLAMP))
    q = (1.0 + e) * (1.0 + e)
    t = (q - 1.0) * pl.reciprocal(q + 1.0, approx=True)
    return jnp.where(z > MISH_CLAMP, z, z * t)


def _make_mlp_kernel(num_layers):
    """Fused kernel: refs = (x, [w,gamma,beta] * num_layers, out)."""
    def kernel(*refs):
        x_ref, o_ref = refs[0], refs[-1]
        layer_refs = refs[1:-1]
        h = x_ref[...].astype(jnp.float32)
        for l in range(num_layers):          # unrolled at trace time
            w_ref, g_ref, b_ref = layer_refs[3 * l: 3 * l + 3]
            h = _dense_block(h, w_ref[...], g_ref[...], b_ref[...])
        o_ref[...] = h.astype(o_ref.dtype)
    return kernel


@jax.jit
def mlp_forward(x, params):
    n, c_in = x.shape
    vmem = pl.BlockSpec(memory_space=pltpu.MemorySpace.VMEM)

    # Zero-pad every feature axis to a multiple of 128 (lane-dense), batch
    # axis untouched.  Padding is sliced off after the call.
    inputs = [_pad_axis(x, _round_up(c_in, LANE), 1)]
    for layer in params:
        ci, co = layer["w"].shape
        ci_p, co_p = _round_up(ci, LANE), _round_up(co, LANE)
        inputs.append(_pad_axis(_pad_axis(layer["w"], ci_p, 0), co_p, 1))
        inputs.append(_pad_axis(layer["gamma"], co_p, 1))
        inputs.append(_pad_axis(layer["beta"], co_p, 1))

    c_out = params[-1]["w"].shape[1]
    c_out_p = _round_up(c_out, LANE)

    out_p = pl.pallas_call(
        _make_mlp_kernel(len(params)),
        out_shape=jax.ShapeDtypeStruct((n, c_out_p), jnp.float32),
        in_specs=[vmem] * len(inputs),
        out_specs=vmem,
    )(*inputs)
    return out_p[:, :c_out]


def init_mlp_params(key, inchannel, outchannel, num_layers=2):
    """PyTorch defaults: Linear weight ~ U(-1/sqrt(fan_in), 1/sqrt(fan_in));
    BatchNorm1d gamma=1, beta=0.  The Linear bias is not materialised — in
    training-mode BN it is exactly cancelled by the batch-mean subtraction."""
    params = []
    c_in = inchannel
    for _ in range(num_layers):
        key, kw = jax.random.split(key)
        bound = 1.0 / float(c_in) ** 0.5
        params.append({
            "w": jax.random.uniform(kw, (c_in, outchannel), jnp.float32,
                                    -bound, bound),
            "gamma": jnp.ones((1, outchannel), jnp.float32),
            "beta": jnp.zeros((1, outchannel), jnp.float32),
        })
        c_in = outchannel
    return params


def _reference(x, params):
    """Pure-JAX f32 reference of the same forward (bias cancels under BN)."""
    h = x
    for layer in params:
        y = h @ layer["w"]
        mean = y.mean(0, keepdims=True)
        var = ((y - mean) ** 2).mean(0, keepdims=True)
        z = layer["gamma"] * (y - mean) / jnp.sqrt(var + BN_EPS) + layer["beta"]
        h = z * jnp.tanh(jax.nn.softplus(z))
    return h


# TODO(synk): BatchNorm1d running_mean/running_var momentum updates (stateful
# training-time buffers) are not tracked; they do not affect this forward output.

if __name__ == "__main__":
    key = jax.random.PRNGKey(0)
    key, kx, kp = jax.random.split(key, 3)

    N, IN_CH, OUT_CH = 8, 16, 32
    x = jax.random.normal(kx, (N, IN_CH), jnp.float32)
    params = init_mlp_params(kp, IN_CH, OUT_CH, num_layers=2)

    out = mlp_forward(x, params)
    jax.block_until_ready(out)

    assert out.shape == (N, OUT_CH), out.shape
    assert jnp.isfinite(out).all()

    ref = _reference(x, params)
    max_err = float(jnp.max(jnp.abs(out - ref)))
    assert jnp.allclose(out, ref, atol=1e-1, rtol=1e-1), max_err

    print("KERNEL_OK")
</pallas_src>

<mosaic_0001>
module attributes {stable_mosaic.version = 11 : i64} {
  func.func @kernel(%arg0: memref<8x128xf32, #tpu.memory_space<vmem>>, %arg1: memref<128x128xf32, #tpu.memory_space<vmem>>, %arg2: memref<1x128xf32, #tpu.memory_space<vmem>>, %arg3: memref<1x128xf32, #tpu.memory_space<vmem>>, %arg4: memref<128x128xf32, #tpu.memory_space<vmem>>, %arg5: memref<1x128xf32, #tpu.memory_space<vmem>>, %arg6: memref<1x128xf32, #tpu.memory_space<vmem>>, %arg7: memref<8x128xf32, #tpu.memory_space<vmem>>) attributes {dimension_semantics = [], scalar_prefetch = 0 : i64, scratch_operands = 0 : i64, tpu.core_type = #tpu.core_type<tc>} {
    %c0 = arith.constant 0 : index
    %c0_0 = arith.constant 0 : index
    %0 = vector.load %arg0[%c0, %c0_0] : memref<8x128xf32, #tpu.memory_space<vmem>>, vector<8x128xf32>
    %c0_1 = arith.constant 0 : index
    %c0_2 = arith.constant 0 : index
    %1 = vector.load %arg1[%c0_1, %c0_2] : memref<128x128xf32, #tpu.memory_space<vmem>>, vector<128x128xf32>
    %c0_3 = arith.constant 0 : index
    %c0_4 = arith.constant 0 : index
    %2 = vector.load %arg2[%c0_3, %c0_4] : memref<1x128xf32, #tpu.memory_space<vmem>>, vector<1x128xf32>
    %c0_5 = arith.constant 0 : index
    %c0_6 = arith.constant 0 : index
    %3 = vector.load %arg3[%c0_5, %c0_6] : memref<1x128xf32, #tpu.memory_space<vmem>>, vector<1x128xf32>
    %4 = arith.truncf %0 : vector<8x128xf32> to vector<8x128xbf16>
    %5 = arith.truncf %1 : vector<128x128xf32> to vector<128x128xbf16>
    %cst = arith.constant dense<0.000000e+00> : vector<8x128xf32>
    %6 = tpu.matmul %4, %5, %cst {dimension_numbers = #tpu.dot_dimension_numbers<[1], [0], [0], [1], [0, 0, 1, 1], [], []>} : vector<8x128xbf16>, vector<128x128xbf16>, vector<8x128xf32> -> vector<8x128xf32>
    %cst_7 = arith.constant dense<0.000000e+00> : vector<128xf32>
    %7 = vector.multi_reduction <add>, %6, %cst_7 [0] : vector<8x128xf32> to vector<128xf32>
    %8 = vector.shape_cast %7 : vector<128xf32> to vector<1x128xf32>
    %cst_8 = arith.constant 1.250000e-01 : f32
    %9 = vector.broadcast %cst_8 : f32 to vector<1x128xf32>
    %10 = arith.mulf %8, %9 : vector<1x128xf32>
    %11 = vector.broadcast %10 : vector<1x128xf32> to vector<8x128xf32>
    %12 = arith.subf %6, %11 : vector<8x128xf32>
    %13 = arith.mulf %12, %12 : vector<8x128xf32>
    %cst_9 = arith.constant dense<0.000000e+00> : vector<128xf32>
    %14 = vector.multi_reduction <add>, %13, %cst_9 [0] : vector<8x128xf32> to vector<128xf32>
    %15 = vector.shape_cast %14 : vector<128xf32> to vector<1x128xf32>
    %cst_10 = arith.constant 1.250000e-01 : f32
    %16 = vector.broadcast %cst_10 : f32 to vector<1x128xf32>
    %17 = arith.mulf %15, %16 : vector<1x128xf32>
    %cst_11 = arith.constant 9.99999974E-6 : f32
    %18 = vector.broadcast %cst_11 : f32 to vector<1x128xf32>
    %19 = arith.addf %17, %18 : vector<1x128xf32>
    %20 = math.rsqrt %19 : vector<1x128xf32>
    %21 = vector.broadcast %20 : vector<1x128xf32> to vector<8x128xf32>
    %22 = arith.mulf %12, %21 : vector<8x128xf32>
    %23 = vector.broadcast %2 : vector<1x128xf32> to vector<8x128xf32>
    %24 = arith.mulf %23, %22 : vector<8x128xf32>
    %25 = vector.broadcast %3 : vector<1x128xf32> to vector<8x128xf32>
    %26 = arith.addf %24, %25 : vector<8x128xf32>
    %cst_12 = arith.constant 2.000000e+01 : f32
    %27 = vector.broadcast %cst_12 : f32 to vector<8x128xf32>
    %28 = arith.minimumf %26, %27 : vector<8x128xf32>
    %29 = math.exp %28 : vector<8x128xf32>
    %cst_13 = arith.constant 1.000000e+00 : f32
    %30 = vector.broadcast %cst_13 : f32 to vector<8x128xf32>
    %31 = arith.addf %30, %29 : vector<8x128xf32>
    %cst_14 = arith.constant 1.000000e+00 : f32
    %32 = vector.broadcast %cst_14 : f32 to vector<8x128xf32>
    %33 = arith.addf %32, %29 : vector<8x128xf32>
    %34 = arith.mulf %31, %33 : vector<8x128xf32>
    %cst_15 = arith.constant 1.000000e+00 : f32
    %35 = vector.broadcast %cst_15 : f32 to vector<8x128xf32>
    %36 = arith.subf %34, %35 : vector<8x128xf32>
    %cst_16 = arith.constant 1.000000e+00 : f32
    %37 = vector.broadcast %cst_16 : f32 to vector<8x128xf32>
    %38 = arith.addf %34, %37 : vector<8x128xf32>
    %39 = tpu.reciprocal %38 {approx = true} : vector<8x128xf32> -> vector<8x128xf32>
    %40 = arith.mulf %36, %39 : vector<8x128xf32>
    %cst_17 = arith.constant 2.000000e+01 : f32
    %41 = vector.broadcast %cst_17 : f32 to vector<8x128xf32>
    %42 = arith.cmpf ogt, %26, %41 : vector<8x128xf32>
    %43 = arith.mulf %26, %40 : vector<8x128xf32>
    %44 = arith.select %42, %26, %43 : vector<8x128xi1>, vector<8x128xf32>
    %c0_18 = arith.constant 0 : index
    %c0_19 = arith.constant 0 : index
    %45 = vector.load %arg4[%c0_18, %c0_19] : memref<128x128xf32, #tpu.memory_space<vmem>>, vector<128x128xf32>
    %c0_20 = arith.constant 0 : index
    %c0_21 = arith.constant 0 : index
    %46 = vector.load %arg5[%c0_20, %c0_21] : memref<1x128xf32, #tpu.memory_space<vmem>>, vector<1x128xf32>
    %c0_22 = arith.constant 0 : index
    %c0_23 = arith.constant 0 : index
    %47 = vector.load %arg6[%c0_22, %c0_23] : memref<1x128xf32, #tpu.memory_space<vmem>>, vector<1x128xf32>
    %48 = arith.truncf %44 : vector<8x128xf32> to vector<8x128xbf16>
    %49 = arith.truncf %45 : vector<128x128xf32> to vector<128x128xbf16>
    %cst_24 = arith.constant dense<0.000000e+00> : vector<8x128xf32>
    %50 = tpu.matmul %48, %49, %cst_24 {dimension_numbers = #tpu.dot_dimension_numbers<[1], [0], [0], [1], [0, 0, 1, 1], [], []>} : vector<8x128xbf16>, vector<128x128xbf16>, vector<8x128xf32> -> vector<8x128xf32>
    %cst_25 = arith.constant dense<0.000000e+00> : vector<128xf32>
    %51 = vector.multi_reduction <add>, %50, %cst_25 [0] : vector<8x128xf32> to vector<128xf32>
    %52 = vector.shape_cast %51 : vector<128xf32> to vector<1x128xf32>
    %cst_26 = arith.constant 1.250000e-01 : f32
    %53 = vector.broadcast %cst_26 : f32 to vector<1x128xf32>
    %54 = arith.mulf %52, %53 : vector<1x128xf32>
    %55 = vector.broadcast %54 : vector<1x128xf32> to vector<8x128xf32>
    %56 = arith.subf %50, %55 : vector<8x128xf32>
    %57 = arith.mulf %56, %56 : vector<8x128xf32>
    %cst_27 = arith.constant dense<0.000000e+00> : vector<128xf32>
    %58 = vector.multi_reduction <add>, %57, %cst_27 [0] : vector<8x128xf32> to vector<128xf32>
    %59 = vector.shape_cast %58 : vector<128xf32> to vector<1x128xf32>
    %cst_28 = arith.constant 1.250000e-01 : f32
    %60 = vector.broadcast %cst_28 : f32 to vector<1x128xf32>
    %61 = arith.mulf %59, %60 : vector<1x128xf32>
    %cst_29 = arith.constant 9.99999974E-6 : f32
    %62 = vector.broadcast %cst_29 : f32 to vector<1x128xf32>
    %63 = arith.addf %61, %62 : vector<1x128xf32>
    %64 = math.rsqrt %63 : vector<1x128xf32>
    %65 = vector.broadcast %64 : vector<1x128xf32> to vector<8x128xf32>
    %66 = arith.mulf %56, %65 : vector<8x128xf32>
    %67 = vector.broadcast %46 : vector<1x128xf32> to vector<8x128xf32>
    %68 = arith.mulf %67, %66 : vector<8x128xf32>
    %69 = vector.broadcast %47 : vector<1x128xf32> to vector<8x128xf32>
    %70 = arith.addf %68, %69 : vector<8x128xf32>
    %cst_30 = arith.constant 2.000000e+01 : f32
    %71 = vector.broadcast %cst_30 : f32 to vector<8x128xf32>
    %72 = arith.minimumf %70, %71 : vector<8x128xf32>
    %73 = math.exp %72 : vector<8x128xf32>
    %cst_31 = arith.constant 1.000000e+00 : f32
    %74 = vector.broadcast %cst_31 : f32 to vector<8x128xf32>
    %75 = arith.addf %74, %73 : vector<8x128xf32>
    %cst_32 = arith.constant 1.000000e+00 : f32
    %76 = vector.broadcast %cst_32 : f32 to vector<8x128xf32>
    %77 = arith.addf %76, %73 : vector<8x128xf32>
    %78 = arith.mulf %75, %77 : vector<8x128xf32>
    %cst_33 = arith.constant 1.000000e+00 : f32
    %79 = vector.broadcast %cst_33 : f32 to vector<8x128xf32>
    %80 = arith.subf %78, %79 : vector<8x128xf32>
    %cst_34 = arith.constant 1.000000e+00 : f32
    %81 = vector.broadcast %cst_34 : f32 to vector<8x128xf32>
    %82 = arith.addf %78, %81 : vector<8x128xf32>
    %83 = tpu.reciprocal %82 {approx = true} : vector<8x128xf32> -> vector<8x128xf32>
    %84 = arith.mulf %80, %83 : vector<8x128xf32>
    %cst_35 = arith.constant 2.000000e+01 : f32
    %85 = vector.broadcast %cst_35 : f32 to vector<8x128xf32>
    %86 = arith.cmpf ogt, %70, %85 : vector<8x128xf32>
    %87 = arith.mulf %70, %84 : vector<8x128xf32>
    %88 = arith.select %86, %70, %87 : vector<8x128xi1>, vector<8x128xf32>
    %c0_36 = arith.constant 0 : index
    %c0_37 = arith.constant 0 : index
    %89 = vector.load %arg7[%c0_36, %c0_37] : memref<8x128xf32, #tpu.memory_space<vmem>>, vector<8x128xf32>
    tpu.vector_store %arg7[%c0_36, %c0_37], %88 {strides = array<i32>} : memref<8x128xf32, #tpu.memory_space<vmem>>, vector<8x128xf32>,
    return
  }
}

</mosaic_0001>

<bundles_post_ra>
// kernel: mlp_forward.1
= control target key start
LH: loop header
LB: loop body
LE: loop exit
PB: predicated region body
PF: predicated region fallthrough
CT: control target
= control target key end

     0   :  { %v371_v3 = vmov 0.0   ;;  %vm372_vm0 = vmmov 0   ;;  %s555_s0 = inlined_call_operand.vmem [shape: f32[8,128], index: 0, kind: input, shape index: {}]   ;;  %s556_s1 = inlined_call_operand.vmem [shape: f32[128,128], index: 1, kind: input, shape index: {}]   ;;  %s557_s2 = inlined_call_operand.vmem [shape: f32[1,128], index: 2, kind: input, shape index: {}]   ;;  %s558_s3 = inlined_call_operand.vmem [shape: f32[1,128], index: 3, kind: input, shape index: {}]   ;;  %s559_s4 = inlined_call_operand.vmem [shape: f32[128,128], index: 4, kind: input, shape index: {}]   ;;  %s560_s5 = inlined_call_operand.vmem [shape: f32[1,128], index: 5, kind: input, shape index: {}]   ;;  %s561_s6 = inlined_call_operand.vmem [shape: f32[1,128], index: 6, kind: input, shape index: {}]   ;;  %s562_s7 = inlined_call_operand.hbm [shape: f32[8,128], index: 7, kind: output, shape index: {}]  }
   0x1   :  { %v29_v0 = vld [vmem:[%s556_s1] sm:$0xff]  ;;  %v30_v1 = vld [vmem:[%s556_s1 + $0x8] sm:$0xff]  ;;  %v31_v2 = vld [vmem:[%s556_s1 + $0x10] sm:$0xff]  ;;  %292 = vmatprep.subr.bf16.mxu0 %v371_v3  ;;  %308 = vmatprep.mubr.msk.bf16.mxu0 %vm372_vm0, %v371_v3 }
   0x2   :  { %v48_v4 = vpack.c.bf16 %v30_v1, %v29_v0  ;;  %v32_v5 = vld [vmem:[%s556_s1 + $0x18] sm:$0xff]  ;;  %312 = vmatprep.subr.bf16.mxu1 %v371_v3  ;;  %328 = vmatprep.mubr.msk.bf16.mxu1 %vm372_vm0, %v371_v3  ;;  %v33_v7 = vld [vmem:[%s556_s1 + $0x20] sm:$0xff]  ;;  %v34_v8 = vld [vmem:[%s556_s1 + $0x28] sm:$0xff] }
   0x3   :  { %v49_v6 = vpack.c.bf16 %v32_v5, %v31_v2 }
   0x4   :  { %293 = vmatpush3.bf16.msra.mxu0 %v48_v4 }
   0x5   :  { %294 = vmatprep.subr.bf16.mxu0 %v371_v3 }
   0x6   :  { %12 = vsyncpa [#allocation3], 0  ;;  %v50_v9 = vpack.c.bf16 %v34_v8, %v33_v7  ;;  %v35_v10 = vld [vmem:[%s556_s1 + $0x30] sm:$0xff]  ;;  %v36_v11 = vld [vmem:[%s556_s1 + $0x38] sm:$0xff]  ;;  %s373_s22 = smov [#allocation2]  }
   0x7   :  { %v51_v12 = vpack.c.bf16 %v36_v11, %v35_v10  ;;  %v37_v13 = vld [vmem:[%s556_s1 + $0x40] sm:$0xff]  ;;  %v38_v14 = vld [vmem:[%s556_s1 + $0x48] sm:$0xff]  ;;  %v39_v16 = vld [vmem:[%s556_s1 + $0x50] sm:$0xff] }
   0x8   :  { %295 = vmatpush3.bf16.msra.mxu0 %v49_v6  ;;  %v52_v15 = vpack.c.bf16 %v38_v14, %v37_v13  ;;  %v40_v17 = vld [vmem:[%s556_s1 + $0x58] sm:$0xff]  ;;  %v41_v19 = vld [vmem:[%s556_s1 + $0x60] sm:$0xff]  ;;  %v42_v20 = vld [vmem:[%s556_s1 + $0x68] sm:$0xff] }
   0x9   :  { %296 = vmatprep.subr.bf16.mxu0 %v371_v3  ;;  %v53_v18 = vpack.c.bf16 %v40_v17, %v39_v16  ;;  %v54_v21 = vpack.c.bf16 %v42_v20, %v41_v19  ;;  %v43_v22 = vld [vmem:[%s556_s1 + $0x70] sm:$0xff]  ;;  %v44_v23 = vld [vmem:[%s556_s1 + $0x78] sm:$0xff]  ;;  %v28_v25 = vld [vmem:[%s555_s0] sm:$0xff] }
   0xa   :  { %v55_v24 = vpack.c.bf16 %v44_v23, %v43_v22  ;;  %v47_v26 = vpack.c.bf16 %v28_v25, %v28_v25  ;;  %v141_v27 = vld [vmem:[%s559_s4] sm:$0xff]  ;;  %v142_v28 = vld [vmem:[%s559_s4 + $0x8] sm:$0xff]  ;;  %v143_v29 = vld [vmem:[%s559_s4 + $0x10] sm:$0xff] }
   0xb   :  { %v160_v30 = vpack.c.bf16 %v142_v28, %v141_v27  ;;  %v144_v31 = vld [vmem:[%s559_s4 + $0x18] sm:$0xff]  ;;  %v145_v33 = vld [vmem:[%s559_s4 + $0x20] sm:$0xff]  ;;  %v146_v34 = vld [vmem:[%s559_s4 + $0x28] sm:$0xff] }
   0xc   :  { %297 = vmatpush3.bf16.msra.mxu0 %v50_v9  ;;  %v161_v32 = vpack.c.bf16 %v144_v31, %v143_v29  ;;  %v162_v35 = vpack.c.bf16 %v146_v34, %v145_v33  ;;  %v147_v36 = vld [vmem:[%s559_s4 + $0x30] sm:$0xff]  ;;  %v148_v37 = vld [vmem:[%s559_s4 + $0x38] sm:$0xff]  ;;  %v149_v39 = vld [vmem:[%s559_s4 + $0x40] sm:$0xff] }
   0xd   :  { %298 = vmatprep.subr.bf16.mxu0 %v371_v3  ;;  %313 = vmatpush3.bf16.msra.mxu1 %v160_v30  ;;  %v163_v38 = vpack.c.bf16 %v148_v37, %v147_v36  ;;  %v150_v40 = vld [vmem:[%s559_s4 + $0x48] sm:$0xff]  ;;  %v151_v42 = vld [vmem:[%s559_s4 + $0x50] sm:$0xff]  ;;  %v152_v43 = vld [vmem:[%s559_s4 + $0x58] sm:$0xff] }
   0xe   :  { %314 = vmatprep.subr.bf16.mxu1 %v371_v3  ;;  %v164_v41 = vpack.c.bf16 %v150_v40, %v149_v39  ;;  %v165_v44 = vpack.c.bf16 %v152_v43, %v151_v42  ;;  %v153_v45 = vld [vmem:[%s559_s4 + $0x60] sm:$0xff]  ;;  %v154_v46 = vld [vmem:[%s559_s4 + $0x68] sm:$0xff]  ;;  %v155_v48 = vld [vmem:[%s559_s4 + $0x70] sm:$0xff] }
   0xf   :  { %v166_v47 = vpack.c.bf16 %v154_v46, %v153_v45  ;;  %v156_v49 = vld [vmem:[%s559_s4 + $0x78] sm:$0xff]  ;;  %v268_v9 = vld [vmem:[%s557_s2] ss:$0 sm:$0xff] }
  0x10   :  { %299 = vmatpush3.bf16.msra.mxu0 %v51_v12  ;;  %v167_v50 = vpack.c.bf16 %v156_v49, %v155_v48  ;;  %v269_v11 = vld [vmem:[%s558_s3] ss:$0 sm:$0xff] }
  0x11   :  { %300 = vmatprep.subr.bf16.mxu0 %v371_v3  ;;  %315 = vmatpush3.bf16.msra.mxu1 %v161_v32  ;;  %v271_v48 = vld [vmem:[%s560_s5] ss:$0 sm:$0xff]  ;;  %s260_s5 = sshll.u32 %s373_s22, 4  ;;  %s261_s5 = int_to_ptr.vmem [resolvable:$true] %s260_s5 }
  0x12   :  { %316 = vmatprep.subr.bf16.mxu1 %v371_v3  ;;  %p352_p1 = scmp.lt.s32.totalorder %s261_s5, %s261_s5 }
  0x14   :  { %301 = vmatpush3.bf16.msra.mxu0 %v52_v15 }
  0x15   :  { %302 = vmatprep.subr.bf16.mxu0 %v371_v3  ;;  %317 = vmatpush3.bf16.msra.mxu1 %v162_v35 }
  0x16   :  { %318 = vmatprep.subr.bf16.mxu1 %v371_v3 }
  0x18   :  { %303 = vmatpush3.bf16.msra.mxu0 %v53_v18 }
  0x19   :  { %304 = vmatprep.subr.bf16.mxu0 %v371_v3  ;;  %319 = vmatpush3.bf16.msra.mxu1 %v163_v38 }
  0x1a   :  { %320 = vmatprep.subr.bf16.mxu1 %v371_v3 }
  0x1c   :  { %305 = vmatpush3.bf16.msra.mxu0 %v54_v21 }
  0x1d   :  { %306 = vmatprep.subr.bf16.mxu0 %v371_v3  ;;  %321 = vmatpush3.bf16.msra.mxu1 %v164_v41 }
  0x1e   :  { %322 = vmatprep.subr.bf16.mxu1 %v371_v3 }
  0x20   :  { %307 = vmatpush3.bf16.msra.mxu0 %v55_v24 }
  0x21   :  { %323 = vmatpush3.bf16.msra.mxu1 %v165_v44 }
  0x22   :  { %324 = vmatprep.subr.bf16.mxu1 %v371_v3 }
  0x23   :  { %309 = vmatmul.mubr.bf16.vlgmr.msra.gmra.mrb[0].mxu0 %v47_v26 }
  0x25   :  { %325 = vmatpush3.bf16.msra.mxu1 %v166_v47 }
  0x26   :  { %326 = vmatprep.subr.bf16.mxu1 %v371_v3 }
  0x29   :  { %327 = vmatpush3.bf16.msra.mxu1 %v167_v50  ;;  %v272_v50 = vld [vmem:[%s561_s6] ss:$0 sm:$0xff]  ;;  %s347_s6 = scalar_lea.vmem %s261_s5, 128 }
  0x2a   :  { %p348_p0 = scmp.ne.s32.totalorder %s261_s5, %s347_s6  ;;  %p353_p2 = scmp.lt.s32.totalorder %s347_s6, %s347_s6 }
  0x2c   :  { %p354_p3 = por %p353_p2, %p352_p1 }
  0x2e   :  { %p355_p4 = pnand %p354_p3, %p348_p0 }
  0xf6   :  { %v90_v51 = vpop.f32.mrb[0].mxu0 }
  0xf7   :  { %v96_v52 = vrot.slane %v90_v51, 4  ;;  %v310_v53 = vpop.f32.mrb[1].mxu0 }
  0xf8   :  { %v93_v54 = vpop.f32.mrb[2].mxu0 }
  0xf9   :  { %v97_v55 = vadd.f32 %v96_v52, %v90_v51  ;;  %v311_v56 = vpop.f32.mrb[3].mxu0 }
  0xfb   :  { %v98_v57 = vrot.slane %v97_v55, 2 }
  0xfd   :  { %v99_v58 = vadd.f32 %v98_v57, %v97_v55 }
  0xff   :  { %v100_v59 = vrot.slane %v99_v58, 1 }
 0x101   :  { %v101_v60 = vadd.f32 %v100_v59, %v99_v58 }
 0x103   :  { %v102_v61 = vmul.f32 0.125, %v101_v60 }
 0x105   :  { %v103_v62 = vsub.f32 %v90_v51, %v102_v61 }
 0x107   :  { %v104_v63 = vmul.f32 %v103_v62, %v103_v62 }
 0x109   :  { %v105_v0 = vrot.slane %v104_v63, 4 }
 0x10b   :  { %v106_v1 = vadd.f32 %v105_v0, %v104_v63 }
 0x10d   :  { %v107_v2 = vrot.slane %v106_v1, 2 }
 0x10f   :  { %v108_v4 = vadd.f32 %v107_v2, %v106_v1 }
 0x111   :  { %v109_v5 = vrot.slane %v108_v4, 1 }
 0x113   :  { %v110_v3 = vadd.f32 %v109_v5, %v108_v4 }
 0x115   :  { %v111_v6 = vmul.f32 0.125, %v110_v3 }
 0x117   :  { %v112_v7 = vadd.f32 1e-05, %v111_v6 }
 0x119   :  { %335 = vrsqrt.f32 %v112_v7 }
 0x123   :  { %v336_v8 = vpop.eup %335 }
 0x124   :  { %v114_v10 = vmul.f32 %v336_v8, %v103_v62 }
 0x126   :  { %v121_v12 = vmul.f32 %v268_v9, %v114_v10 }
 0x128   :  { %v128_v13 = vadd.f32 %v269_v11, %v121_v12 }
 0x12a   :  { %v129_v14 = vmin.f32 %v128_v13, 20.0  ;;  %vm138_vm1 = vcmp.gt.f32.partialorder %v128_v13, 20.0 }
 0x12c   :  { %v130_v15 = vmul.f32 1.442695, %v129_v14 }
 0x12e   :  { %337 = vpow2.f32 %v130_v15 }
 0x138   :  { %v338_v16 = vpop.eup %337 }
 0x139   :  { %v132_v17 = vadd.f32 1.0, %v338_v16 }
 0x13b   :  { %v133_v18 = vmul.f32 %v132_v17, %v132_v17 }
 0x13d   :  { %v135_v19 = vadd.f32 1.0, %v133_v18  ;;  %v270_v20 = vadd.f32 -1.0, %v133_v18 }
 0x13f   :  { %339 = vrcp.f32 %v135_v19 }
 0x149   :  { %v340_v21 = vpop.eup %339 }
 0x14a   :  { %v137_v22 = vmul.f32 %v340_v21, %v270_v20 }
 0x14c   :  { %v139_v23 = vmul.f32 %v137_v22, %v128_v13 }
 0x14e   :  { %v140_v24 = vsel %vm138_vm1, %v128_v13, %v139_v23 }
 0x14f   :  { %v159_v25 = vpack.c.bf16 %v140_v24, %v140_v24 }
 0x151   :  { %329 = vmatmul.mubr.bf16.vlgmr.msra.gmra.mrb[0].mxu1 %v159_v25 }
 0x224   :  { %v202_v26 = vpop.f32.mrb[0].mxu1 }
 0x225   :  { %v208_v27 = vrot.slane %v202_v26, 4  ;;  %v330_v28 = vpop.f32.mrb[1].mxu1 }
 0x226   :  { %v205_v29 = vpop.f32.mrb[2].mxu1 }
 0x227   :  { %v209_v30 = vadd.f32 %v208_v27, %v202_v26  ;;  %v331_v31 = vpop.f32.mrb[3].mxu1 }
 0x229   :  { %v210_v32 = vrot.slane %v209_v30, 2 }
 0x22b   :  { %v211_v33 = vadd.f32 %v210_v32, %v209_v30 }
 0x22d   :  { %v212_v34 = vrot.slane %v211_v33, 1 }
 0x22f   :  { %v213_v35 = vadd.f32 %v212_v34, %v211_v33 }
 0x231   :  { %v214_v36 = vmul.f32 0.125, %v213_v35 }
 0x233   :  { %v215_v37 = vsub.f32 %v202_v26, %v214_v36 }
 0x235   :  { %v216_v38 = vmul.f32 %v215_v37, %v215_v37 }
 0x237   :  { %v217_v39 = vrot.slane %v216_v38, 4 }
 0x239   :  { %v218_v40 = vadd.f32 %v217_v39, %v216_v38 }
 0x23b   :  { %v219_v41 = vrot.slane %v218_v40, 2 }
 0x23d   :  { %v220_v42 = vadd.f32 %v219_v41, %v218_v40 }
 0x23f   :  { %v221_v43 = vrot.slane %v220_v42, 1 }
 0x241   :  { %v222_v44 = vadd.f32 %v221_v43, %v220_v42 }
 0x243   :  { %v223_v45 = vmul.f32 0.125, %v222_v44 }
 0x245   :  { %v224_v46 = vadd.f32 1e-05, %v223_v45 }
 0x247   :  { %341 = vrsqrt.f32 %v224_v46 }
 0x251   :  { %v342_v47 = vpop.eup %341 }
 0x252   :  { %v226_v49 = vmul.f32 %v342_v47, %v215_v37 }
 0x254   :  { %v233_v51 = vmul.f32 %v271_v48, %v226_v49 }
 0x256   :  { %v240_v52 = vadd.f32 %v272_v50, %v233_v51 }
 0x258   :  { %v241_v53 = vmin.f32 %v240_v52, 20.0  ;;  %vm250_vm2 = vcmp.gt.f32.partialorder %v240_v52, 20.0 }
 0x25a   :  { %v242_v54 = vmul.f32 1.442695, %v241_v53 }
 0x25c   :  { %343 = vpow2.f32 %v242_v54 }
 0x266   :  { %v344_v55 = vpop.eup %343 }
 0x267   :  { %v244_v56 = vadd.f32 1.0, %v344_v55 }
 0x269   :  { %v245_v57 = vmul.f32 %v244_v56, %v244_v56 }
 0x26b   :  { %v247_v58 = vadd.f32 1.0, %v245_v57  ;;  %v273_v59 = vadd.f32 -1.0, %v245_v57 }
 0x26d   :  { %345 = vrcp.f32 %v247_v58 }
 0x277   :  { %v346_v60 = vpop.eup %345 }
 0x278   :  { %v249_v61 = vmul.f32 %v346_v60, %v273_v59 }
 0x27a   :  { %v251_v62 = vmul.f32 %v249_v61, %v240_v52 }
 0x27c   :  { %v252_v63 = vsel %vm250_vm2, %v240_v52, %v251_v62 }
 0x27d   :  { %253 = vst [vmem:[#allocation2] sm:$0xff] %v252_v63 }
 0x27e   :  { %358 = shalt.err (!%p355_p4)
}
 0x27f   :  { %s359_s25 = scalar_lea.hbm %s562_s7, 128 }
 0x280   :  { %p360_p5 = scmp.ne.s32.totalorder %s562_s7, %s359_s25  ;;  %p363_p6 = scmp.lt.u32.totalorder %s359_s25, %s562_s7 }
 0x282   :  { %p365_p7 = pnand %p363_p6, %p360_p5 }
 0x284   :  { %368 = shalt.err (!%p365_p7)
}
 0x285   :  { %263 = dma.vmem_to_hbm [thread:$0]  %s261_s5, 128, %s562_s7, [#allocation3]  }
 0x286   :  { %369 = dma.done.wait [#allocation3], 128  }
 0x287   :  { %370 = vsyncadd [#allocation3], 4294967168 }
 0x288   :  { %267 = vsyncpa [#allocation3], 1 }

</bundles_post_ra>
